<compile_context>
chip_gen: v7x
topology: tpu7x:2x2x1
jax: 0.10.0
libtpu: 0.0.40
codegen_flags: <defaults>
</compile_context>

<pallas_src>
import math
import functools

import jax
import jax.numpy as jnp
from jax.experimental import pallas as pl
from jax.experimental.pallas import tpu as pltpu

INPUT_DIM = 15
HIDDEN_DIMS = [256, 128, 64]
OUTPUT_DIM = 5           # module default output_dim=5 (docstring says 4, code says 5)
OUT_PAD = 128            # lane-dense padded output width
LN_EPS = 1e-5            # PyTorch nn.LayerNorm default eps
NEG_INF = -1e30
VEC_ROWS = 16            # packed bias/LN slab rows (10 used, padded to a sublane multiple)
VEC_WIDTH = 256
MAX_TILE_B = 512         # cap per-step tile (keeps v7x VMEM happy, fills pipeline)

H1, H2, H3 = HIDDEN_DIMS


# --------------------------------------------------------------------------- #
# Kernel
# --------------------------------------------------------------------------- #
def mlp_kernel(x_ref, w1_ref, w2_ref, w3_ref, w4_ref, vec_ref, out_ref):
    x = x_ref[...]                      # (TILE_B, 15) f32
    vecs = vec_ref[...]                 # (16, 256)   f32 packed bias/LN slab

    b1, g1, be1 = vecs[0:1, :H1], vecs[1:2, :H1], vecs[2:3, :H1]
    b2, g2, be2 = vecs[3:4, :H2], vecs[4:5, :H2], vecs[5:6, :H2]
    b3, g3, be3 = vecs[6:7, :H3], vecs[7:8, :H3], vecs[8:9, :H3]
    b4 = vecs[9:10, :OUT_PAD]           # lanes 0..4 real bias, 5..127 = -1e30

    def dense(h, w_ref, b):
        # bf16 MXU operands, f32 accumulation; bias add in f32.
        return jnp.dot(h.astype(jnp.bfloat16), w_ref[...],
                       preferred_element_type=jnp.float32) + b

    def layernorm(h, gamma, beta):
        # One-pass variance: independent sum(h) / sum(h*h) reductions (XLU ILP).
        d = h.shape[-1]
        inv_d = 1.0 / d
        mean = jnp.sum(h, axis=-1, keepdims=True) * inv_d
        mean_sq = jnp.sum(h * h, axis=-1, keepdims=True) * inv_d
        var = mean_sq - mean * mean
        return (h - mean) * jax.lax.rsqrt(var + LN_EPS) * gamma + beta

    h = layernorm(jnp.maximum(dense(x, w1_ref, b1), 0.0), g1, be1)
    h = layernorm(jnp.maximum(dense(h, w2_ref, b2), 0.0), g2, be2)
    h = layernorm(jnp.maximum(dense(h, w3_ref, b3), 0.0), g3, be3)

    logits = dense(h, w4_ref, b4)       # (TILE_B, 128); padded lanes sit at -1e30
    m = jnp.max(logits, axis=-1, keepdims=True)
    e = jnp.exp(logits - m)             # padded lanes underflow to exactly 0
    out_ref[...] = e / jnp.sum(e, axis=-1, keepdims=True)


# --------------------------------------------------------------------------- #
# Parameter construction / packing
# --------------------------------------------------------------------------- #
def init_params(key):
    """xavier_uniform_ weights, bias = 0.01, LayerNorm gamma=1 / beta=0.
    Weights stored [in_dim, out_dim] (transpose of torch Linear)."""
    dims = [INPUT_DIM] + HIDDEN_DIMS + [OUTPUT_DIM]
    keys = jax.random.split(key, len(dims) - 1)
    weights, biases = [], []
    for i, (din, dout) in enumerate(zip(dims[:-1], dims[1:])):
        bound = math.sqrt(6.0 / (din + dout))
        weights.append(jax.random.uniform(keys[i], (din, dout), jnp.float32,
                                          -bound, bound))
        biases.append(jnp.full((dout,), 0.01, jnp.float32))
    gammas = [jnp.ones((d,), jnp.float32) for d in HIDDEN_DIMS]
    betas = [jnp.zeros((d,), jnp.float32) for d in HIDDEN_DIMS]
    return weights, biases, gammas, betas


def pack_operands(weights, biases, gammas, betas):
    """bf16 weights (output head padded to OUT_PAD cols) + one f32 bias/LN slab."""
    w1, w2, w3, w4 = weights
    w4p = jnp.zeros((w4.shape[0], OUT_PAD), jnp.float32).at[:, :OUTPUT_DIM].set(w4)
    weights_bf16 = tuple(w.astype(jnp.bfloat16) for w in (w1, w2, w3, w4p))

    slab = jnp.zeros((VEC_ROWS, VEC_WIDTH), jnp.float32)

    def put(s, row, v):
        return s.at[row, :v.shape[0]].set(v)

    slab = put(slab, 0, biases[0]); slab = put(slab, 1, gammas[0]); slab = put(slab, 2, betas[0])
    slab = put(slab, 3, biases[1]); slab = put(slab, 4, gammas[1]); slab = put(slab, 5, betas[1])
    slab = put(slab, 6, biases[2]); slab = put(slab, 7, gammas[2]); slab = put(slab, 8, betas[2])
    b4_row = jnp.full((OUT_PAD,), NEG_INF, jnp.float32).at[:OUTPUT_DIM].set(biases[3])
    slab = slab.at[9, :OUT_PAD].set(b4_row)
    return weights_bf16, slab


# --------------------------------------------------------------------------- #
# pallas_call wrapper
# --------------------------------------------------------------------------- #
def _choose_tile_b(batch):
    if batch >= MAX_TILE_B:
        return MAX_TILE_B
    return max(8, ((batch + 7) // 8) * 8)


@functools.partial(jax.jit, static_argnums=(6,))
def _mlp_pallas(x_pad, w1, w2, w3, w4, vec_slab, tile_b):
    b_pad = x_pad.shape[0]
    grid = (b_pad // tile_b,)
    const2d = lambda shape: pl.BlockSpec(shape, lambda i: (0, 0))
    return pl.pallas_call(
        mlp_kernel,
        out_shape=jax.ShapeDtypeStruct((b_pad, OUT_PAD), jnp.float32),
        grid=grid,
        in_specs=[
            pl.BlockSpec((tile_b, INPUT_DIM), lambda i: (i, 0)),
            const2d(w1.shape), const2d(w2.shape),
            const2d(w3.shape), const2d(w4.shape),
            const2d(vec_slab.shape),
        ],
        out_specs=pl.BlockSpec((tile_b, OUT_PAD), lambda i: (i, 0)),
        compiler_params=pltpu.CompilerParams(
            dimension_semantics=("parallel",),
            vmem_limit_bytes=48 * 1024 * 1024,
        ),
    )(x_pad, w1, w2, w3, w4, vec_slab)


def execution_timing_forward(x, weights_bf16, vec_slab):
    """x: [B, 15] or [15] float32 -> strategy probabilities [B, 5] or [5]."""
    squeeze_output = (x.ndim == 1)
    if squeeze_output:
        x = x[None, :]
    B = x.shape[0]

    tile_b = _choose_tile_b(B)
    b_pad = ((B + tile_b - 1) // tile_b) * tile_b
    if b_pad != B:
        x = jnp.pad(x, ((0, b_pad - B), (0, 0)))

    w1, w2, w3, w4 = weights_bf16
    out = _mlp_pallas(x, w1, w2, w3, w4, vec_slab, tile_b)
    probs = out[:B, :OUTPUT_DIM]
    if squeeze_output:
        probs = probs[0]
    return probs


# --------------------------------------------------------------------------- #
# Pure-JAX reference (same bf16 matmul-operand casting as the kernel)
# --------------------------------------------------------------------------- #
def reference_forward(x, weights, biases, gammas, betas):
    if x.ndim == 1:
        x = x[None, :]

    def mm(a, w):
        return jnp.dot(a.astype(jnp.bfloat16), w.astype(jnp.bfloat16),
                       preferred_element_type=jnp.float32)

    h = x
    for w, b, g, be in zip(weights[:3], biases[:3], gammas, betas):
        h = jnp.maximum(mm(h, w) + b, 0.0)
        mean = jnp.mean(h, axis=-1, keepdims=True)
        var = jnp.mean((h - mean) ** 2, axis=-1, keepdims=True)
        h = (h - mean) * jax.lax.rsqrt(var + LN_EPS) * g + be
    logits = mm(h, weights[3]) + biases[3]
    return jax.nn.softmax(logits, axis=-1)


# TODO(synk): compile_for_inference / fast_inference (torch.jit.trace) and
# structlog logging are runtime plumbing with no Pallas equivalent; omitted.

if __name__ == "__main__":
    key = jax.random.PRNGKey(0)
    pkey, xkey = jax.random.split(key)
    weights, biases, gammas, betas = init_params(pkey)
    weights_bf16, vec_slab = pack_operands(weights, biases, gammas, betas)

    B = 8
    x = jax.random.normal(xkey, (B, INPUT_DIM), jnp.float32)

    probs = execution_timing_forward(x, weights_bf16, vec_slab)
    probs = jax.block_until_ready(probs)

    ref = reference_forward(x, weights, biases, gammas, betas)

    assert probs.shape == (B, OUTPUT_DIM)
    assert bool(jnp.all(jnp.isfinite(probs)))
    assert jnp.allclose(jnp.sum(probs, axis=-1), 1.0, atol=1e-5)
    assert jnp.allclose(probs, ref, atol=2e-3, rtol=2e-3)

    # single-vector path ([15] -> [5]), mirrors the torch module's squeeze logic
    p1 = jax.block_until_ready(
        execution_timing_forward(x[0], weights_bf16, vec_slab))
    assert p1.shape == (OUTPUT_DIM,)
    assert jnp.allclose(jnp.sum(p1), 1.0, atol=1e-5)

    print("KERNEL_OK")
</pallas_src>

<mosaic_0001>
module attributes {stable_mosaic.version = 11 : i64} {
  func.func @mlp_kernel(%arg0: i32, %arg1: memref<8x15xf32, #tpu.memory_space<vmem>>, %arg2: memref<15x256xbf16, #tpu.memory_space<vmem>>, %arg3: memref<256x128xbf16, #tpu.memory_space<vmem>>, %arg4: memref<128x64xbf16, #tpu.memory_space<vmem>>, %arg5: memref<64x128xbf16, #tpu.memory_space<vmem>>, %arg6: memref<16x256xf32, #tpu.memory_space<vmem>>, %arg7: memref<8x128xf32, #tpu.memory_space<vmem>>) attributes {dimension_semantics = [#tpu.dimension_semantics<parallel>], iteration_bounds = array<i64: 1>, scalar_prefetch = 0 : i64, scratch_operands = 0 : i64, tpu.core_type = #tpu.core_type<tc>, window_params = [{transform_indices = @transform_0, window_bounds = array<i64: 8, 15>}, {pipeline_mode = #tpu.pipeline_mode<synchronous>, transform_indices = @transform_1, window_bounds = array<i64: 15, 256>}, {pipeline_mode = #tpu.pipeline_mode<synchronous>, transform_indices = @transform_2, window_bounds = array<i64: 256, 128>}, {pipeline_mode = #tpu.pipeline_mode<synchronous>, transform_indices = @transform_3, window_bounds = array<i64: 128, 64>}, {pipeline_mode = #tpu.pipeline_mode<synchronous>, transform_indices = @transform_4, window_bounds = array<i64: 64, 128>}, {pipeline_mode = #tpu.pipeline_mode<synchronous>, transform_indices = @transform_5, window_bounds = array<i64: 16, 256>}, {transform_indices = @transform_6, window_bounds = array<i64: 8, 128>}]} {
    %c0 = arith.constant 0 : index
    %c0_0 = arith.constant 0 : index
    %0 = vector.load %arg1[%c0, %c0_0] : memref<8x15xf32, #tpu.memory_space<vmem>>, vector<8x15xf32>
    %c0_1 = arith.constant 0 : index
    %c0_2 = arith.constant 0 : index
    %1 = vector.load %arg6[%c0_1, %c0_2] : memref<16x256xf32, #tpu.memory_space<vmem>>, vector<16x256xf32>
    %2 = vector.extract_strided_slice %1 {offsets = [0, 0], sizes = [1, 256], strides = [1, 1]} : vector<16x256xf32> to vector<1x256xf32>
    %3 = vector.extract_strided_slice %1 {offsets = [1, 0], sizes = [1, 256], strides = [1, 1]} : vector<16x256xf32> to vector<1x256xf32>
    %4 = vector.extract_strided_slice %1 {offsets = [2, 0], sizes = [1, 256], strides = [1, 1]} : vector<16x256xf32> to vector<1x256xf32>
    %5 = vector.extract_strided_slice %1 {offsets = [3, 0], sizes = [1, 128], strides = [1, 1]} : vector<16x256xf32> to vector<1x128xf32>
    %6 = vector.extract_strided_slice %1 {offsets = [4, 0], sizes = [1, 128], strides = [1, 1]} : vector<16x256xf32> to vector<1x128xf32>
    %7 = vector.extract_strided_slice %1 {offsets = [5, 0], sizes = [1, 128], strides = [1, 1]} : vector<16x256xf32> to vector<1x128xf32>
    %8 = vector.extract_strided_slice %1 {offsets = [6, 0], sizes = [1, 64], strides = [1, 1]} : vector<16x256xf32> to vector<1x64xf32>
    %9 = vector.extract_strided_slice %1 {offsets = [7, 0], sizes = [1, 64], strides = [1, 1]} : vector<16x256xf32> to vector<1x64xf32>
    %10 = vector.extract_strided_slice %1 {offsets = [8, 0], sizes = [1, 64], strides = [1, 1]} : vector<16x256xf32> to vector<1x64xf32>
    %11 = vector.extract_strided_slice %1 {offsets = [9, 0], sizes = [1, 128], strides = [1, 1]} : vector<16x256xf32> to vector<1x128xf32>
    %12 = arith.truncf %0 : vector<8x15xf32> to vector<8x15xbf16>
    %c0_3 = arith.constant 0 : index
    %c0_4 = arith.constant 0 : index
    %13 = vector.load %arg2[%c0_3, %c0_4] : memref<15x256xbf16, #tpu.memory_space<vmem>>, vector<15x256xbf16>
    %cst = arith.constant dense<0.000000e+00> : vector<8x256xf32>
    %14 = tpu.matmul %12, %13, %cst {dimension_numbers = #tpu.dot_dimension_numbers<[1], [0], [0], [1], [0, 0, 1, 1], [], []>} : vector<8x15xbf16>, vector<15x256xbf16>, vector<8x256xf32> -> vector<8x256xf32>
    %15 = vector.broadcast %2 : vector<1x256xf32> to vector<8x256xf32>
    %16 = arith.addf %14, %15 : vector<8x256xf32>
    %cst_5 = arith.constant 0.000000e+00 : f32
    %17 = vector.broadcast %cst_5 : f32 to vector<8x256xf32>
    %18 = arith.maximumf %16, %17 : vector<8x256xf32>
    %cst_6 = arith.constant dense<0.000000e+00> : vector<8xf32>
    %19 = vector.multi_reduction <add>, %18, %cst_6 [1] : vector<8x256xf32> to vector<8xf32>
    %20 = vector.shape_cast %19 : vector<8xf32> to vector<8x1xf32>
    %cst_7 = arith.constant 3.906250e-03 : f32
    %21 = vector.broadcast %cst_7 : f32 to vector<8x1xf32>
    %22 = arith.mulf %20, %21 : vector<8x1xf32>
    %23 = arith.mulf %18, %18 : vector<8x256xf32>
    %cst_8 = arith.constant dense<0.000000e+00> : vector<8xf32>
    %24 = vector.multi_reduction <add>, %23, %cst_8 [1] : vector<8x256xf32> to vector<8xf32>
    %25 = vector.shape_cast %24 : vector<8xf32> to vector<8x1xf32>
    %cst_9 = arith.constant 3.906250e-03 : f32
    %26 = vector.broadcast %cst_9 : f32 to vector<8x1xf32>
    %27 = arith.mulf %25, %26 : vector<8x1xf32>
    %28 = arith.mulf %22, %22 : vector<8x1xf32>
    %29 = arith.subf %27, %28 : vector<8x1xf32>
    %30 = vector.broadcast %22 : vector<8x1xf32> to vector<8x256xf32>
    %31 = arith.subf %18, %30 : vector<8x256xf32>
    %cst_10 = arith.constant 9.99999974E-6 : f32
    %32 = vector.broadcast %cst_10 : f32 to vector<8x1xf32>
    %33 = arith.addf %29, %32 : vector<8x1xf32>
    %34 = math.rsqrt %33 : vector<8x1xf32>
    %35 = vector.broadcast %34 : vector<8x1xf32> to vector<8x256xf32>
    %36 = arith.mulf %31, %35 : vector<8x256xf32>
    %37 = vector.broadcast %3 : vector<1x256xf32> to vector<8x256xf32>
    %38 = arith.mulf %36, %37 : vector<8x256xf32>
    %39 = vector.broadcast %4 : vector<1x256xf32> to vector<8x256xf32>
    %40 = arith.addf %38, %39 : vector<8x256xf32>
    %41 = arith.truncf %40 : vector<8x256xf32> to vector<8x256xbf16>
    %c0_11 = arith.constant 0 : index
    %c0_12 = arith.constant 0 : index
    %42 = vector.load %arg3[%c0_11, %c0_12] : memref<256x128xbf16, #tpu.memory_space<vmem>>, vector<256x128xbf16>
    %cst_13 = arith.constant dense<0.000000e+00> : vector<8x128xf32>
    %43 = tpu.matmul %41, %42, %cst_13 {dimension_numbers = #tpu.dot_dimension_numbers<[1], [0], [0], [1], [0, 0, 1, 1], [], []>} : vector<8x256xbf16>, vector<256x128xbf16>, vector<8x128xf32> -> vector<8x128xf32>
    %44 = vector.broadcast %5 : vector<1x128xf32> to vector<8x128xf32>
    %45 = arith.addf %43, %44 : vector<8x128xf32>
    %cst_14 = arith.constant 0.000000e+00 : f32
    %46 = vector.broadcast %cst_14 : f32 to vector<8x128xf32>
    %47 = arith.maximumf %45, %46 : vector<8x128xf32>
    %cst_15 = arith.constant dense<0.000000e+00> : vector<8xf32>
    %48 = vector.multi_reduction <add>, %47, %cst_15 [1] : vector<8x128xf32> to vector<8xf32>
    %49 = vector.shape_cast %48 : vector<8xf32> to vector<8x1xf32>
    %cst_16 = arith.constant 7.812500e-03 : f32
    %50 = vector.broadcast %cst_16 : f32 to vector<8x1xf32>
    %51 = arith.mulf %49, %50 : vector<8x1xf32>
    %52 = arith.mulf %47, %47 : vector<8x128xf32>
    %cst_17 = arith.constant dense<0.000000e+00> : vector<8xf32>
    %53 = vector.multi_reduction <add>, %52, %cst_17 [1] : vector<8x128xf32> to vector<8xf32>
    %54 = vector.shape_cast %53 : vector<8xf32> to vector<8x1xf32>
    %cst_18 = arith.constant 7.812500e-03 : f32
    %55 = vector.broadcast %cst_18 : f32 to vector<8x1xf32>
    %56 = arith.mulf %54, %55 : vector<8x1xf32>
    %57 = arith.mulf %51, %51 : vector<8x1xf32>
    %58 = arith.subf %56, %57 : vector<8x1xf32>
    %59 = vector.broadcast %51 : vector<8x1xf32> to vector<8x128xf32>
    %60 = arith.subf %47, %59 : vector<8x128xf32>
    %cst_19 = arith.constant 9.99999974E-6 : f32
    %61 = vector.broadcast %cst_19 : f32 to vector<8x1xf32>
    %62 = arith.addf %58, %61 : vector<8x1xf32>
    %63 = math.rsqrt %62 : vector<8x1xf32>
    %64 = vector.broadcast %63 : vector<8x1xf32> to vector<8x128xf32>
    %65 = arith.mulf %60, %64 : vector<8x128xf32>
    %66 = vector.broadcast %6 : vector<1x128xf32> to vector<8x128xf32>
    %67 = arith.mulf %65, %66 : vector<8x128xf32>
    %68 = vector.broadcast %7 : vector<1x128xf32> to vector<8x128xf32>
    %69 = arith.addf %67, %68 : vector<8x128xf32>
    %70 = arith.truncf %69 : vector<8x128xf32> to vector<8x128xbf16>
    %c0_20 = arith.constant 0 : index
    %c0_21 = arith.constant 0 : index
    %71 = vector.load %arg4[%c0_20, %c0_21] : memref<128x64xbf16, #tpu.memory_space<vmem>>, vector<128x64xbf16>
    %cst_22 = arith.constant dense<0.000000e+00> : vector<8x64xf32>
    %72 = tpu.matmul %70, %71, %cst_22 {dimension_numbers = #tpu.dot_dimension_numbers<[1], [0], [0], [1], [0, 0, 1, 1], [], []>} : vector<8x128xbf16>, vector<128x64xbf16>, vector<8x64xf32> -> vector<8x64xf32>
    %73 = vector.broadcast %8 : vector<1x64xf32> to vector<8x64xf32>
    %74 = arith.addf %72, %73 : vector<8x64xf32>
    %cst_23 = arith.constant 0.000000e+00 : f32
    %75 = vector.broadcast %cst_23 : f32 to vector<8x64xf32>
    %76 = arith.maximumf %74, %75 : vector<8x64xf32>
    %cst_24 = arith.constant dense<0.000000e+00> : vector<8xf32>
    %77 = vector.multi_reduction <add>, %76, %cst_24 [1] : vector<8x64xf32> to vector<8xf32>
    %78 = vector.shape_cast %77 : vector<8xf32> to vector<8x1xf32>
    %cst_25 = arith.constant 1.562500e-02 : f32
    %79 = vector.broadcast %cst_25 : f32 to vector<8x1xf32>
    %80 = arith.mulf %78, %79 : vector<8x1xf32>
    %81 = arith.mulf %76, %76 : vector<8x64xf32>
    %cst_26 = arith.constant dense<0.000000e+00> : vector<8xf32>
    %82 = vector.multi_reduction <add>, %81, %cst_26 [1] : vector<8x64xf32> to vector<8xf32>
    %83 = vector.shape_cast %82 : vector<8xf32> to vector<8x1xf32>
    %cst_27 = arith.constant 1.562500e-02 : f32
    %84 = vector.broadcast %cst_27 : f32 to vector<8x1xf32>
    %85 = arith.mulf %83, %84 : vector<8x1xf32>
    %86 = arith.mulf %80, %80 : vector<8x1xf32>
    %87 = arith.subf %85, %86 : vector<8x1xf32>
    %88 = vector.broadcast %80 : vector<8x1xf32> to vector<8x64xf32>
    %89 = arith.subf %76, %88 : vector<8x64xf32>
    %cst_28 = arith.constant 9.99999974E-6 : f32
    %90 = vector.broadcast %cst_28 : f32 to vector<8x1xf32>
    %91 = arith.addf %87, %90 : vector<8x1xf32>
    %92 = math.rsqrt %91 : vector<8x1xf32>
    %93 = vector.broadcast %92 : vector<8x1xf32> to vector<8x64xf32>
    %94 = arith.mulf %89, %93 : vector<8x64xf32>
    %95 = vector.broadcast %9 : vector<1x64xf32> to vector<8x64xf32>
    %96 = arith.mulf %94, %95 : vector<8x64xf32>
    %97 = vector.broadcast %10 : vector<1x64xf32> to vector<8x64xf32>
    %98 = arith.addf %96, %97 : vector<8x64xf32>
    %99 = arith.truncf %98 : vector<8x64xf32> to vector<8x64xbf16>
    %c0_29 = arith.constant 0 : index
    %c0_30 = arith.constant 0 : index
    %100 = vector.load %arg5[%c0_29, %c0_30] : memref<64x128xbf16, #tpu.memory_space<vmem>>, vector<64x128xbf16>
    %cst_31 = arith.constant dense<0.000000e+00> : vector<8x128xf32>
    %101 = tpu.matmul %99, %100, %cst_31 {dimension_numbers = #tpu.dot_dimension_numbers<[1], [0], [0], [1], [0, 0, 1, 1], [], []>} : vector<8x64xbf16>, vector<64x128xbf16>, vector<8x128xf32> -> vector<8x128xf32>
    %102 = vector.broadcast %11 : vector<1x128xf32> to vector<8x128xf32>
    %103 = arith.addf %101, %102 : vector<8x128xf32>
    %cst_32 = arith.constant dense<0xFF800000> : vector<8xf32>
    %104 = vector.multi_reduction <maximumf>, %103, %cst_32 [1] : vector<8x128xf32> to vector<8xf32>
    %105 = vector.shape_cast %104 : vector<8xf32> to vector<8x1xf32>
    %106 = vector.broadcast %105 : vector<8x1xf32> to vector<8x128xf32>
    %107 = arith.subf %103, %106 : vector<8x128xf32>
    %108 = math.exp %107 : vector<8x128xf32>
    %cst_33 = arith.constant dense<0.000000e+00> : vector<8xf32>
    %109 = vector.multi_reduction <add>, %108, %cst_33 [1] : vector<8x128xf32> to vector<8xf32>
    %110 = vector.shape_cast %109 : vector<8xf32> to vector<8x1xf32>
    %111 = vector.broadcast %110 : vector<8x1xf32> to vector<8x128xf32>
    %112 = arith.divf %108, %111 : vector<8x128xf32>
    %c0_34 = arith.constant 0 : index
    %c0_35 = arith.constant 0 : index
    %113 = vector.load %arg7[%c0_34, %c0_35] : memref<8x128xf32, #tpu.memory_space<vmem>>, vector<8x128xf32>
    tpu.vector_store %arg7[%c0_34, %c0_35], %112 {strides = array<i32>} : memref<8x128xf32, #tpu.memory_space<vmem>>, vector<8x128xf32>,
    return
  }
  func.func @transform_0(%arg0: i32) -> (i32, i32) {
    %c0_i32 = arith.constant 0 : i32
    %c0_i32_0 = arith.constant 0 : i32
    return %arg0, %c0_i32 : i32, i32
  }
  func.func @transform_1(%arg0: i32) -> (i32, i32) {
    %c0_i32 = arith.constant 0 : i32
    %c0_i32_0 = arith.constant 0 : i32
    %c0_i32_1 = arith.constant 0 : i32
    return %c0_i32, %c0_i32_0 : i32, i32
  }
  func.func @transform_2(%arg0: i32) -> (i32, i32) {
    %c0_i32 = arith.constant 0 : i32
    %c0_i32_0 = arith.constant 0 : i32
    %c0_i32_1 = arith.constant 0 : i32
    return %c0_i32, %c0_i32_0 : i32, i32
  }
  func.func @transform_3(%arg0: i32) -> (i32, i32) {
    %c0_i32 = arith.constant 0 : i32
    %c0_i32_0 = arith.constant 0 : i32
    %c0_i32_1 = arith.constant 0 : i32
    return %c0_i32, %c0_i32_0 : i32, i32
  }
  func.func @transform_4(%arg0: i32) -> (i32, i32) {
    %c0_i32 = arith.constant 0 : i32
    %c0_i32_0 = arith.constant 0 : i32
    %c0_i32_1 = arith.constant 0 : i32
    return %c0_i32, %c0_i32_0 : i32, i32
  }
  func.func @transform_5(%arg0: i32) -> (i32, i32) {
    %c0_i32 = arith.constant 0 : i32
    %c0_i32_0 = arith.constant 0 : i32
    %c0_i32_1 = arith.constant 0 : i32
    return %c0_i32, %c0_i32_0 : i32, i32
  }
  func.func @transform_6(%arg0: i32) -> (i32, i32) {
    %c0_i32 = arith.constant 0 : i32
    %c0_i32_0 = arith.constant 0 : i32
    return %arg0, %c0_i32 : i32, i32
  }
}

</mosaic_0001>

<bundles_post_ra>
// kernel: _mlp_pallas.1
= control target key start
LH: loop header
LB: loop body
LE: loop exit
PB: predicated region body
PF: predicated region fallthrough
CT: control target
= control target key end

     0   :  { %11 = vsyncpa [#allocation3], 0  ;;  %s966_s0 = inlined_call_operand.vmem [shape: f32[8,15], index: 0, kind: input, shape index: {}]   ;;  %s967_s1 = inlined_call_operand.vmem [shape: bf16[15,256], index: 1, kind: input, shape index: {}]   ;;  %s968_s2 = inlined_call_operand.hbm [shape: bf16[256,128], index: 2, kind: input, shape index: {}]   ;;  %s969_s3 = inlined_call_operand.vmem [shape: bf16[128,64], index: 3, kind: input, shape index: {}]   ;;  %s970_s4 = inlined_call_operand.vmem [shape: bf16[64,128], index: 4, kind: input, shape index: {}]   ;;  %s971_s5 = inlined_call_operand.vmem [shape: f32[16,256], index: 5, kind: input, shape index: {}]   ;;  %s972_s6 = inlined_call_operand.hbm [shape: f32[8,128], index: 6, kind: output, shape index: {}]  }
   0x1   :  { %12 = vsyncpa [#allocation4], 0  ;;  %s793_s21 = smov [#allocation2]   ;;  %s745_s25 = scalar_lea.hbm %s968_s2, 2048 }
   0x2   :  { %s22_s22 = sshll.u32 %s793_s21, 4  ;;  %p746_p0 = scmp.ne.s32.totalorder %s968_s2, %s745_s25  ;;  %s23_s22 = int_to_ptr.vmem [resolvable:$true] %s22_s22 }
   0x3   :  { %p749_p1 = scmp.lt.u32.totalorder %s745_s25, %s968_s2 }
   0x5   :  { %p751_p2 = pnand %p749_p1, %p746_p0 }
   0x7   :  { %754 = shalt.err (!%p751_p2)
}
   0x8   :  { %s755_s30 = scalar_lea.vmem %s23_s22, 2048  ;;  %p760_p4 = scmp.lt.s32.totalorder %s23_s22, %s23_s22 }
   0x9   :  { %p756_p3 = scmp.ne.s32.totalorder %s23_s22, %s755_s30  ;;  %p761_p5 = scmp.lt.s32.totalorder %s755_s30, %s755_s30 }
   0xb   :  { %p762_p6 = por %p761_p5, %p760_p4 }
   0xd   :  { %p763_p7 = pnand %p762_p6, %p756_p3 }
   0xf   :  { %766 = shalt.err (!%p763_p7)
}
  0x10   :  { %s794_s7 = smov 64   ;;  %s795_s8 = smov 4  }
  0x11   :  { %28 = dma.hbm_to_vmem [thread:$0]  %s968_s2, 2048, %s23_s22, [#allocation3], %s794_s7, %s794_s7, %s795_s8  }
  0x12   :  { %789 = dma.done.wait [#allocation3], 2048  }
  0x13   :  { %790 = vsyncadd [#allocation3], 4294965248  ;;  %vm66_vm0 = vcmask 1046528   ;;  %v796_v0 = vmov 0   ;;  %vm67_vm1 = vcmask 1047552   ;;  %v797_v1 = vmov 65535  }
  0x14   :  { %108 = vmatprep.mubr.bf16.mxu0 %v796_v0  ;;  %v68_v2 = vsel %vm66_vm0, 4294967295, %v797_v1  ;;  %v704_v4 = vld [vmem:[%s967_s1 + $0x4] ss:$8 sps:$4 sm:$0xff]   ;;  %v706_v5 = vld [vmem:[%s967_s1] ss:$8 sps:$4 sm:$0xff]   ;;  %vm62_vm2 = vcmask 121856   ;;  %v46_v12 = vlaneseq }
  0x15   :  { %v69_v3 = vsel %vm67_vm1, %v68_v2, 0  ;;  %v39_v6 = vld [vmem:[%s966_s0] sm:$0xff]  ;;  %v870_v16 = vld [vmem:[%s971_s5 + $0x8] sm:$0xff]  ;;  %v711_v33 = vld [vmem:[#allocation2 + $0x50] sm:$0xff]   ;;  %vm799_vm3 = vmmov 0   ;;  %vm465_vm4 = vcmask 523264  }
  0x16   :  { %v74_v7 = vand.u32 %v704_v4, %v69_v3  ;;  %v71_v8 = vand.u32 %v706_v5, %v69_v3  ;;  %v43_v9 = vpack.c.bf16 %v39_v6, %v39_v6  ;;  %v707_v10 = vld [vmem:[#allocation2 + $0x40] sm:$0xff]   ;;  %v857_v13 = vshrl.u32 %v46_v12, 7  ;;  %v709_v31 = vld [vmem:[#allocation2 + $0x48] sm:$0xff]   ;;  %v712_v34 = vld [vmem:[#allocation2 + $0x10] sm:$0xff]  }
  0x17   :  { %v708_v11 = vld [vmem:[#allocation2] sm:$0xff]   ;;  %628 = vmatprep.subr.bf16.mxu1 %v707_v10  ;;  %v710_v32 = vld [vmem:[#allocation2 + $0x8] sm:$0xff]   ;;  %v713_v35 = vld [vmem:[#allocation2 + $0x58] sm:$0xff]   ;;  %v798_v6 = vmov 0.0  }
  0x18   :  { %76 = vmatprep.subr.bf16.mxu0 %v74_v7  ;;  %629 = vmatpush3.bf16.msra.mxu1 %v708_v11  ;;  %v860_v14 = vsub.s32 0, %v857_v13  ;;  %v865_v15 = vld [vmem:[%s971_s5] sm:$0xff]  ;;  %v714_v36 = vld [vmem:[#allocation2 + $0x18] sm:$0xff]   ;;  %v717_v39 = vld [vmem:[#allocation2 + $0x68] sm:$0xff]   ;;  %v877_v52 = vsub.s32 1, %v857_v13  ;;  %v149_v53 = vsub.s32 2, %v857_v13 }
  0x19   :  { %77 = vmatpush1.bf16.msra.mxu0 %v71_v8  ;;  %630 = vmatprep.subr.bf16.mxu1 %v709_v31  ;;  %v715_v37 = vld [vmem:[#allocation2 + $0x60] sm:$0xff]   ;;  %v718_v40 = vld [vmem:[#allocation2 + $0x28] sm:$0xff]   ;;  %v719_v41 = vld [vmem:[#allocation2 + $0x70] sm:$0xff]   ;;  %v193_v7 = vsub.s32 3, %v857_v13 }
  0x1a   :  { %v49_v17 = vrot.slane %v865_v15, %v860_v14  ;;  %v53_v18 = vrot.slane %v870_v16, %v860_v14  ;;  %v716_v38 = vld [vmem:[#allocation2 + $0x20] sm:$0xff]   ;;  %v720_v42 = vld [vmem:[#allocation2 + $0x30] sm:$0xff]   ;;  %v721_v43 = vld [vmem:[#allocation2 + $0x78] sm:$0xff]   ;;  %v144_v56 = vrot.slane %v870_v16, %v877_v52  ;;  %v140_v57 = vrot.slane %v865_v15, %v877_v52  ;;  %664 = vmatprep.subr.bf16.mxu0 %v798_v6 }
  0x1b   :  { %v722_v44 = vld [vmem:[#allocation2 + $0x38] sm:$0xff]   ;;  %v154_v60 = vrot.slane %v870_v16, %v149_v53  ;;  %v150_v62 = vrot.slane %v865_v15, %v149_v53  ;;  %v723_v5 = vld [vmem:[%s969_s3] sm:$0xff]  }
  0x1c   :  { %598 = vmatmul.mubr.msk.bf16.vlgmr.msra.gmra.mrb[0].mxu0 %vm62_vm2, %v43_v9  ;;  %631 = vmatpush3.bf16.msra.mxu1 %v710_v32  ;;  %v194_v9 = vrot.slane %v865_v15, %v193_v7 }
  0x1d   :  { %632 = vmatprep.subr.bf16.mxu1 %v711_v33  ;;  %665 = vmatpush3.bf16.msra.mxu0 %v723_v5 }
  0x1e   :  { %666 = vmatprep.subr.bf16.mxu0 %v798_v6  ;;  %680 = vmatprep.mubr.msk.bf16.mxu0 %vm799_vm3, %v798_v6 }
  0x20   :  { %633 = vmatpush3.bf16.msra.mxu1 %v712_v34  ;;  %v347_v34 = vsub.s32 4, %v857_v13 }
  0x21   :  { %634 = vmatprep.subr.bf16.mxu1 %v713_v35  ;;  %v352_v35 = vsub.s32 5, %v857_v13 }
  0x24   :  { %635 = vmatpush3.bf16.msra.mxu1 %v714_v36 }
  0x25   :  { %636 = vmatprep.subr.bf16.mxu1 %v715_v37  ;;  %v348_v37 = vrot.slane %v865_v15, %v347_v34 }
  0x28   :  { %637 = vmatpush3.bf16.msra.mxu1 %v716_v38 }
  0x29   :  { %638 = vmatprep.subr.bf16.mxu1 %v717_v39 }
  0x2c   :  { %639 = vmatpush3.bf16.msra.mxu1 %v718_v40  ;;  %v353_v40 = vrot.slane %v865_v15, %v352_v35 }
  0x2d   :  { %640 = vmatprep.subr.bf16.mxu1 %v719_v41 }
  0x30   :  { %641 = vmatpush3.bf16.msra.mxu1 %v720_v42 }
  0x31   :  { %642 = vmatprep.subr.bf16.mxu1 %v721_v43 }
  0x34   :  { %643 = vmatpush3.bf16.msra.mxu1 %v722_v44  ;;  %v374_v44 = vsub.s32 6, %v857_v13 }
  0x35   :  { %684 = vmatprep.subr.bf16.mxu1 %v798_v6 }
  0xef   :  { %v110_v19 = vpop.f32.mrb[0].mxu0 }
  0xf0   :  { %v111_v20 = vadd.f32 %v110_v19, %v49_v17  ;;  %v112_v21 = vpop.f32.mrb[1].mxu0 }
  0xf1   :  { %v113_v22 = vadd.f32 %v112_v21, %v53_v18  ;;  %v114_v23 = vpop.f32.mrb[2].mxu0  ;;  %v725_v21 = vld [vmem:[%s969_s3 + $0x10] sm:$0xff]  }
  0xf2   :  { %v117_v24 = vmax.f32 %v111_v20, 0.0  ;;  %v115_v25 = vpop.f32.mrb[3].mxu0  ;;  %v724_v20 = vld [vmem:[%s969_s3 + $0x8] sm:$0xff]   ;;  %v727_v23 = vld [vmem:[%s969_s3 + $0x20] sm:$0xff]  }
  0xf3   :  { %v118_v26 = vmax.f32 %v113_v22, 0.0  ;;  %667 = vmatpush3.bf16.msra.mxu0 %v724_v20  ;;  %v726_v22 = vld [vmem:[%s969_s3 + $0x18] sm:$0xff]   ;;  %v729_v25 = vld [vmem:[%s969_s3 + $0x30] sm:$0xff]  }
  0xf4   :  { %v123_v28 = vmul.f32 %v117_v24, %v117_v24  ;;  %668 = vmatprep.subr.bf16.mxu0 %v798_v6 }
  0xf5   :  { %v119_v27 = vadd.f32 %v118_v26, %v117_v24  ;;  %v124_v29 = vmul.f32 %v118_v26, %v118_v26 }
  0xf7   :  { %120 = vadd.xlane.f32.xlu0 %v119_v27  ;;  %v125_v30 = vadd.f32 %v124_v29, %v123_v28  ;;  %669 = vmatpush3.bf16.msra.mxu0 %v725_v21 }
  0xf8   :  { %670 = vmatprep.subr.bf16.mxu0 %v798_v6 }
  0xfb   :  { %126 = vadd.xlane.f32.xlu0 %v125_v30  ;;  %671 = vmatpush3.bf16.msra.mxu0 %v726_v22 }
  0xfc   :  { %672 = vmatprep.subr.bf16.mxu0 %v798_v6 }
  0xff   :  { %673 = vmatpush3.bf16.msra.mxu0 %v727_v23 }
 0x100   :  { %674 = vmatprep.subr.bf16.mxu0 %v798_v6 }
 0x184   :  { %v121_v45 = vpop.xlane.xlu0 %120 }
 0x185   :  { %v122_v46 = vmul.f32 0.00390625, %v121_v45  ;;  %v375_v45 = vrot.slane %v865_v15, %v374_v44 }
 0x187   :  { %v129_v48 = vmul.f32 %v122_v46, %v122_v46  ;;  %v131_v54 = vsub.f32 %v117_v24, %v122_v46  ;;  %v132_v55 = vsub.f32 %v118_v26, %v122_v46  ;;  %v728_v24 = vld [vmem:[%s969_s3 + $0x28] sm:$0xff]   ;;  %v730_v26 = vld [vmem:[%s969_s3 + $0x38] sm:$0xff]  }
 0x188   :  { %v127_v47 = vpop.xlane.xlu0 %126  ;;  %675 = vmatpush3.bf16.msra.mxu0 %v728_v24 }
 0x189   :  { %v128_v49 = vmul.f32 0.00390625, %v127_v47  ;;  %676 = vmatprep.subr.bf16.mxu0 %v798_v6 }
 0x18b   :  { %v130_v50 = vsub.f32 %v128_v49, %v129_v48 }
 0x18c   :  { %677 = vmatpush3.bf16.msra.mxu0 %v729_v25 }
 0x18d   :  { %v133_v51 = vadd.f32 1e-05, %v130_v50  ;;  %678 = vmatprep.subr.bf16.mxu0 %v798_v6 }
 0x18f   :  { %735 = vrsqrt.f32 %v133_v51 }
 0x190   :  { %679 = vmatpush3.bf16.msra.mxu0 %v730_v26 }
 0x199   :  { %v736_v58 = vpop.eup %735 }
 0x19a   :  { %v136_v59 = vmul.f32 %v736_v58, %v132_v55  ;;  %v135_v61 = vmul.f32 %v736_v58, %v131_v54  ;;  %v733_v58 = vld [vmem:[%s970_s4 + $0x10] sm:$0xff]  }
 0x19c   :  { %v146_v63 = vmul.f32 %v144_v56, %v136_v59  ;;  %v145_v0 = vmul.f32 %v140_v57, %v135_v61  ;;  %v731_v56 = vld [vmem:[%s970_s4] sm:$0xff]   ;;  %v732_v57 = vld [vmem:[%s970_s4 + $0x8] sm:$0xff]   ;;  %v734_v59 = vld [vmem:[%s970_s4 + $0x18] sm:$0xff]   ;;  %s800_s4 = smov [#allocation5]  }
 0x19e   :  { %v156_v1 = vadd.f32 %v154_v60, %v146_v63  ;;  %v155_v2 = vadd.f32 %v150_v62, %v145_v0 }
 0x1a0   :  { %v158_v3 = vpack.c.bf16 %v156_v1, %v156_v1  ;;  %v157_v4 = vpack.c.bf16 %v155_v2, %v155_v2 }
 0x1a2   :  { %323 = vmatprep.mubr.bf16.mxu1 %v158_v3  ;;  %v483_v3 = vsub.s32 7, %v857_v13 }
 0x1a3   :  { %324 = vmatmul.mubr.bf16.vlgmr.msra.gmra.mrb[0].mxu1 %v157_v4  ;;  %v42_v4 = vld [vmem:[%s971_s5 + $0x10] sm:$0xff]  ;;  %s587_s5 = sshll.u32 %s800_s4, 4  ;;  %s588_s5 = int_to_ptr.vmem [resolvable:$true] %s587_s5 }
 0x1a4   :  { %692 = vmatprep.mubr.msk.bf16.mxu1 %vm799_vm3, %v798_v6  ;;  %685 = vmatpush3.bf16.msra.mxu1 %v731_v56  ;;  %v484_v7 = vrot.slane %v865_v15, %v483_v3  ;;  %s767_s0 = scalar_lea.vmem %s588_s5, 128  ;;  %p772_p9 = scmp.lt.s32.totalorder %s588_s5, %s588_s5 }
 0x1a5   :  { %686 = vmatprep.subr.bf16.mxu1 %v798_v6  ;;  %p768_p8 = scmp.ne.s32.totalorder %s588_s5, %s767_s0  ;;  %p773_p10 = scmp.lt.s32.totalorder %s767_s0, %s767_s0 }
 0x1a7   :  { %p774_p11 = por %p773_p10, %p772_p9 }
 0x1a8   :  { %687 = vmatpush3.bf16.msra.mxu1 %v732_v57 }
 0x1a9   :  { %688 = vmatprep.subr.bf16.mxu1 %v798_v6  ;;  %p775_p12 = pnand %p774_p11, %p768_p8 }
 0x1ac   :  { %689 = vmatpush3.bf16.msra.mxu1 %v733_v58 }
 0x1ad   :  { %690 = vmatprep.subr.bf16.mxu1 %v798_v6  ;;  %v489_v6 = vrot.slane %v42_v4, %v860_v14 }
 0x1b0   :  { %691 = vmatpush3.bf16.msra.mxu1 %v734_v59 }
 0x276   :  { %v644_v8 = vpop.f32.mrb[0].mxu1 }
 0x277   :  { %v645_v10 = vpop.f32.mrb[1].mxu1 }
 0x278   :  { %v646_v11 = vadd.f32 %v645_v10, %v644_v8  ;;  %v647_v12 = vpop.f32.mrb[2].mxu1 }
 0x279   :  { %v648_v16 = vpop.f32.mrb[3].mxu1 }
 0x27a   :  { %v326_v17 = vadd.f32 %v646_v11, %v194_v9  ;;  %v503_v16 = vrot.slane %v42_v4, %v877_v52 }
 0x27c   :  { %v331_v18 = vmax.f32 %v326_v17, 0.0 }
 0x27e   :  { %332 = vadd.xlane.f32.xlu1 %v331_v18  ;;  %v335_v19 = vmul.f32 %v331_v18, %v331_v18 }
 0x282   :  { %336 = vadd.xlane.f32.xlu1 %v335_v19 }
 0x30b   :  { %v333_v27 = vpop.xlane.xlu1 %332 }
 0x30c   :  { %v334_v28 = vmul.f32 0.0078125, %v333_v27 }
 0x30e   :  { %v339_v30 = vmul.f32 %v334_v28, %v334_v28  ;;  %v341_v36 = vsub.f32 %v331_v18, %v334_v28 }
 0x30f   :  { %v337_v29 = vpop.xlane.xlu1 %336 }
 0x310   :  { %v338_v31 = vmul.f32 0.0078125, %v337_v29 }
 0x312   :  { %v340_v32 = vsub.f32 %v338_v31, %v339_v30 }
 0x314   :  { %v342_v33 = vadd.f32 1e-05, %v340_v32 }
 0x316   :  { %737 = vrsqrt.f32 %v342_v33 }
 0x320   :  { %v738_v38 = vpop.eup %737 }
 0x321   :  { %v344_v39 = vmul.f32 %v738_v38, %v341_v36 }
 0x323   :  { %v349_v41 = vmul.f32 %v348_v37, %v344_v39 }
 0x325   :  { %v354_v42 = vadd.f32 %v353_v40, %v349_v41 }
 0x327   :  { %v355_v43 = vpack.c.bf16 %v354_v42, %v354_v42 }
 0x329   :  { %681 = vmatmul.mubr.bf16.vlgmr.msra.gmra.mrb[4].mxu0 %v355_v43 }
 0x3fc   :  { %v458_v46 = vpop.f32.mrb[4].mxu0 }
 0x3fd   :  { %v459_v47 = vadd.f32 %v458_v46, %v375_v45  ;;  %v682_v48 = vpop.f32.mrb[5].mxu0 }
 0x3fe   :  { %v461_v49 = vpop.f32.mrb[6].mxu0 }
 0x3ff   :  { %v464_v50 = vmax.f32 %v459_v47, 0.0  ;;  %v683_v51 = vpop.f32.mrb[7].mxu0 }
 0x401   :  { %v466_v53 = vsel %vm465_vm4, %v464_v50, 0.0  ;;  %v470_v54 = vmul.f32 %v464_v50, %v464_v50 }
 0x402   :  { %467 = vadd.xlane.f32.xlu0 %v466_v53 }
 0x403   :  { %v471_v55 = vsel %vm465_vm4, %v470_v54, 0.0 }
 0x404   :  { %472 = vadd.xlane.f32.xlu1 %v471_v55 }
 0x48f   :  { %v468_v60 = vpop.xlane.xlu0 %467 }
 0x490   :  { %v469_v61 = vmul.f32 0.015625, %v468_v60 }
 0x491   :  { %v473_v62 = vpop.xlane.xlu1 %472 }
 0x492   :  { %v475_v63 = vmul.f32 %v469_v61, %v469_v61  ;;  %v474_v0 = vmul.f32 0.015625, %v473_v62  ;;  %v477_v5 = vsub.f32 %v464_v50, %v469_v61 }
 0x494   :  { %v476_v1 = vsub.f32 %v474_v0, %v475_v63 }
 0x496   :  { %v478_v2 = vadd.f32 1e-05, %v476_v1 }
 0x498   :  { %739 = vrsqrt.f32 %v478_v2 }
 0x4a2   :  { %v740_v8 = vpop.eup %739 }
 0x4a3   :  { %v480_v9 = vmul.f32 %v740_v8, %v477_v5 }
 0x4a5   :  { %v485_v10 = vmul.f32 %v484_v7, %v480_v9 }
 0x4a7   :  { %v490_v11 = vadd.f32 %v489_v6, %v485_v10 }
 0x4a9   :  { %v491_v12 = vpack.c.bf16 %v490_v11, %v490_v11 }
 0x4ab   :  { %693 = vmatmul.mubr.msk.bf16.vlgmr.msra.gmra.mrb[4].mxu1 %vm465_vm4, %v491_v12 }
 0x57e   :  { %v565_v17 = vpop.f32.mrb[4].mxu1 }
 0x57f   :  { %v566_v13 = vadd.f32 %v565_v17, %v503_v16  ;;  %v694_v18 = vpop.f32.mrb[5].mxu1 }
 0x580   :  { %v568_v19 = vpop.f32.mrb[6].mxu1 }
 0x581   :  { %571 = vmax.xlane.f32.xlu0 %v566_v13  ;;  %v695_v20 = vpop.f32.mrb[7].mxu1 }
 0x60e   :  { %v572_v21 = vpop.xlane.xlu0 %571 }
 0x60f   :  { %v573_v22 = vsub.f32 %v566_v13, %v572_v21 }
 0x611   :  { %v574_v15 = vmul.f32 1.442695, %v573_v22 }
 0x613   :  { %741 = vpow2.f32 %v574_v15 }
 0x61d   :  { %v742_v23 = vpop.eup %741 }
 0x61e   :  { %576 = vadd.xlane.f32.xlu1 %v742_v23 }
 0x6ab   :  { %v577_v14 = vpop.xlane.xlu1 %576 }
 0x6ac   :  { %743 = vrcp.f32 %v577_v14 }
 0x6b6   :  { %v744_v24 = vpop.eup %743 }
 0x6b7   :  { %v579_v25 = vmul.f32 %v744_v24, %v742_v23 }
 0x6b9   :  { %580 = vst [vmem:[#allocation5] sm:$0xff] %v579_v25 }
 0x6ba   :  { %778 = shalt.err (!%p775_p12)
}
 0x6bb   :  { %s779_s19 = scalar_lea.hbm %s972_s6, 128 }
 0x6bc   :  { %p780_p13 = scmp.ne.s32.totalorder %s972_s6, %s779_s19  ;;  %p783_p0 = scmp.lt.u32.totalorder %s779_s19, %s972_s6 }
 0x6be   :  { %p785_p1 = pnand %p783_p0, %p780_p13 }
 0x6c0   :  { %788 = shalt.err (!%p785_p1)
}
 0x6c1   :  { %590 = dma.vmem_to_hbm [thread:$0]  %s588_s5, 128, %s972_s6, [#allocation4]  }
 0x6c2   :  { %791 = dma.done.wait [#allocation4], 128  }
 0x6c3   :  { %792 = vsyncadd [#allocation4], 4294967168 }
 0x6c4   :  { %594 = vsyncpa [#allocation3], 1 }
 0x6c5   :  { %595 = vsyncpa [#allocation4], 1 }

</bundles_post_ra>
